<compile_context>
chip_gen: v6e
topology: v6e:2x2x1
jax: 0.10.0
libtpu: 0.0.40
codegen_flags: <defaults>
</compile_context>

<pallas_src>
import functools

import jax
import jax.numpy as jnp
from jax.experimental import pallas as pl
from jax.experimental.pallas import tpu as pltpu


def _round_up(x, m):
    return (x + m - 1) // m * m


def _cdiv(a, b):
    return (a + b - 1) // b


def generator_kernel(x_ref, w1_ref, b1_ref, w2_ref, b2_ref, o_ref, *, bf16_tanh):
    # Layer 1: (bt, z) @ (z, H) on the MXU, bf16 inputs / f32 accumulation.
    h = jnp.dot(x_ref[...], w1_ref[...], preferred_element_type=jnp.float32)
    h = h + b1_ref[...]
    h = jnp.maximum(h, 0.01 * h)                  # LeakyReLU(0.01): single VPU max
    # Layer 2: (bt, H) @ (H, N), bf16 inputs / f32 accumulation.
    y = jnp.dot(h.astype(jnp.bfloat16), w2_ref[...],
                preferred_element_type=jnp.float32)
    y = y + b2_ref[...]
    if bf16_tanh:
        # v6e/v7x: EUP is bf16-native (~2x f32 rate); output store is bf16 anyway.
        o_ref[...] = jnp.tanh(y.astype(jnp.bfloat16))
    else:
        # v5e and older: no bf16 EUP — tanh in f32, downcast only for the store.
        o_ref[...] = jnp.tanh(y).astype(jnp.bfloat16)


def _bf16_tanh_ok():
    """True on chips with a bf16-native EUP (v6e / v7x); False on v2-v5."""
    try:
        kind = jax.devices()[0].device_kind.lower()
    except Exception:
        return True
    return not any(v in kind for v in ("v2", "v3", "v4", "v5"))


@functools.partial(jax.jit,
                   static_argnames=("batch_tile", "bf16_tanh", "out_dtype"))
def generator_forward(x, w1, b1, w2, b2, *, batch_tile=4096,
                      bf16_tanh=True, out_dtype=jnp.bfloat16):
    """Forward pass of the Generator.

    x  : (B, z_dim)        f32 (cast to bf16 for streaming)
    w1 : (z_dim, hidden)   stored (in, out), transposed vs. PyTorch
    b1 : (1, hidden)
    w2 : (hidden, out_dim)
    b2 : (1, out_dim)
    returns (B, out_dim), bf16 by default (upcast only if out_dtype says so).
    """
    B, z_dim = x.shape
    hidden = w1.shape[1]
    out_dim = w2.shape[1]

    # ---- tile / padding choices (all static under jit) -------------------
    # Cap the tile at ~ceil(B/2) so the parallel grid has >= 2 steps for
    # mid-size batches (lets v7x shard the batch axis over both TensorCores);
    # round to a multiple of 8 for sublane alignment.
    bt = min(batch_tile, _round_up(_cdiv(B, 2), 8))
    bt = max(8, _round_up(bt, 8))
    B_pad = _round_up(B, bt)              # grid = B_pad // bt (>= 1)
    H_pad = _round_up(hidden, 128)        # lane-aligned hidden
    N_pad = _round_up(out_dim, 128)       # lane-dense output (unmasked vst)

    # ---- dtype / padding plumbing ----------------------------------------
    xb = x.astype(jnp.bfloat16)
    if B_pad != B:
        xb = jnp.pad(xb, ((0, B_pad - B), (0, 0)))

    w1b = jnp.pad(w1.astype(jnp.bfloat16), ((0, 0), (0, H_pad - hidden)))
    b1f = jnp.pad(b1.astype(jnp.float32).reshape(1, hidden),
                  ((0, 0), (0, H_pad - hidden)))
    w2b = jnp.pad(w2.astype(jnp.bfloat16),
                  ((0, H_pad - hidden), (0, N_pad - out_dim)))
    b2f = jnp.pad(b2.astype(jnp.float32).reshape(1, out_dim),
                  ((0, 0), (0, N_pad - out_dim)))

    grid = (B_pad // bt,)

    cost = pl.CostEstimate(
        flops=2 * B_pad * (z_dim * H_pad + H_pad * N_pad),
        transcendentals=B_pad * N_pad,
        bytes_accessed=(B_pad * z_dim * 2          # x (bf16)
                        + z_dim * H_pad * 2        # w1 (bf16)
                        + H_pad * N_pad * 2        # w2 (bf16)
                        + (H_pad + N_pad) * 4      # biases (f32)
                        + B_pad * N_pad * 2),      # output (bf16)
    )

    kernel = functools.partial(generator_kernel, bf16_tanh=bool(bf16_tanh))

    out_padded = pl.pallas_call(
        kernel,
        out_shape=jax.ShapeDtypeStruct((B_pad, N_pad), jnp.bfloat16),
        grid_spec=pltpu.PrefetchScalarGridSpec(
            num_scalar_prefetch=0,
            grid=grid,
            in_specs=[
                pl.BlockSpec((bt, z_dim), lambda i: (i, 0)),     # x tile
                pl.BlockSpec((z_dim, H_pad), lambda i: (0, 0)),  # W1 (resident)
                pl.BlockSpec((1, H_pad), lambda i: (0, 0)),      # b1
                pl.BlockSpec((H_pad, N_pad), lambda i: (0, 0)),  # W2 (resident)
                pl.BlockSpec((1, N_pad), lambda i: (0, 0)),      # b2
            ],
            out_specs=pl.BlockSpec((bt, N_pad), lambda i: (i, 0)),
        ),
        compiler_params=pltpu.CompilerParams(
            dimension_semantics=("parallel",),
            vmem_limit_bytes=48 * 1024 * 1024,
        ),
        cost_estimate=cost,
    )(xb, w1b, b1f, w2b, b2f)

    # Slice off padding only if any was added; the slice runs on the bf16
    # buffer (half the copy cost of the old f32 path).
    out = out_padded
    if B_pad != B or N_pad != out_dim:
        out = out[:B, :out_dim]
    if out.dtype != out_dtype:
        out = out.astype(out_dtype)
    return out


def init_params(key, z_dim, hidden, out_dim, dtype=jnp.float32):
    """Deterministic init mimicking PyTorch nn.Linear default (uniform ±1/sqrt(fan_in))."""
    k1, k2, k3, k4 = jax.random.split(key, 4)
    bound1 = 1.0 / jnp.sqrt(z_dim)
    bound2 = 1.0 / jnp.sqrt(hidden)
    # Stored as (in, out) — transposed relative to PyTorch's (out, in).
    w1 = jax.random.uniform(k1, (z_dim, hidden), dtype, -bound1, bound1)
    b1 = jax.random.uniform(k2, (1, hidden), dtype, -bound1, bound1)
    w2 = jax.random.uniform(k3, (hidden, out_dim), dtype, -bound2, bound2)
    b2 = jax.random.uniform(k4, (1, out_dim), dtype, -bound2, bound2)
    return w1, b1, w2, b2


def reference_forward(x, w1, b1, w2, b2):
    h = x @ w1 + b1
    h = jnp.where(h > 0, h, 0.01 * h)
    return jnp.tanh(h @ w2 + b2)


if __name__ == "__main__":
    key = jax.random.PRNGKey(0)
    B, z_dim, hidden, out_dim = 8, 32, 256, 64

    kx, kp = jax.random.split(key)
    x = jax.random.normal(kx, (B, z_dim), jnp.float32)
    w1, b1, w2, b2 = init_params(kp, z_dim, hidden, out_dim)

    bf16_tanh = _bf16_tanh_ok()

    # Small batch: tile collapses to 8 rows, grid of 1.
    out = generator_forward(x, w1, b1, w2, b2, bf16_tanh=bf16_tanh)
    out = jax.block_until_ready(out)
    ref = reference_forward(x, w1, b1, w2, b2)
    assert out.shape == (B, out_dim)
    assert out.dtype == jnp.bfloat16
    assert jnp.allclose(out.astype(jnp.float32), ref, atol=3e-2, rtol=3e-2)

    # Ragged batch: exercises batch zero-padding + a 2-step "parallel" grid.
    B2 = 300
    x2 = jax.random.normal(jax.random.PRNGKey(1), (B2, z_dim), jnp.float32)
    out2 = jax.block_until_ready(
        generator_forward(x2, w1, b1, w2, b2, bf16_tanh=bf16_tanh))
    ref2 = reference_forward(x2, w1, b1, w2, b2)
    assert out2.shape == (B2, out_dim)
    assert jnp.allclose(out2.astype(jnp.float32), ref2, atol=3e-2, rtol=3e-2)

    print("KERNEL_OK")
</pallas_src>

<mosaic_0001>
module attributes {stable_mosaic.version = 11 : i64} {
  func.func @generator_kernel(%arg0: i32, %arg1: memref<8x32xbf16, #tpu.memory_space<vmem>>, %arg2: memref<32x256xbf16, #tpu.memory_space<vmem>>, %arg3: memref<1x256xf32, #tpu.memory_space<vmem>>, %arg4: memref<256x128xbf16, #tpu.memory_space<vmem>>, %arg5: memref<1x128xf32, #tpu.memory_space<vmem>>, %arg6: memref<8x128xbf16, #tpu.memory_space<vmem>>) attributes {dimension_semantics = [#tpu.dimension_semantics<parallel>], iteration_bounds = array<i64: 1>, scalar_prefetch = 0 : i64, scratch_operands = 0 : i64, tpu.core_type = #tpu.core_type<tc>, window_params = [{transform_indices = @transform_0, window_bounds = array<i64: 8, 32>}, {pipeline_mode = #tpu.pipeline_mode<synchronous>, transform_indices = @transform_1, window_bounds = array<i64: 32, 256>}, {pipeline_mode = #tpu.pipeline_mode<synchronous>, transform_indices = @transform_2, window_bounds = array<i64: 1, 256>}, {pipeline_mode = #tpu.pipeline_mode<synchronous>, transform_indices = @transform_3, window_bounds = array<i64: 256, 128>}, {pipeline_mode = #tpu.pipeline_mode<synchronous>, transform_indices = @transform_4, window_bounds = array<i64: 1, 128>}, {transform_indices = @transform_5, window_bounds = array<i64: 8, 128>}]} {
    %c0 = arith.constant 0 : index
    %c0_0 = arith.constant 0 : index
    %0 = vector.load %arg1[%c0, %c0_0] : memref<8x32xbf16, #tpu.memory_space<vmem>>, vector<8x32xbf16>
    %c0_1 = arith.constant 0 : index
    %c0_2 = arith.constant 0 : index
    %1 = vector.load %arg2[%c0_1, %c0_2] : memref<32x256xbf16, #tpu.memory_space<vmem>>, vector<32x256xbf16>
    %cst = arith.constant dense<0.000000e+00> : vector<8x256xf32>
    %2 = tpu.matmul %0, %1, %cst {dimension_numbers = #tpu.dot_dimension_numbers<[1], [0], [0], [1], [0, 0, 1, 1], [], []>} : vector<8x32xbf16>, vector<32x256xbf16>, vector<8x256xf32> -> vector<8x256xf32>
    %c0_3 = arith.constant 0 : index
    %c0_4 = arith.constant 0 : index
    %3 = vector.load %arg3[%c0_3, %c0_4] : memref<1x256xf32, #tpu.memory_space<vmem>>, vector<1x256xf32>
    %4 = vector.broadcast %3 : vector<1x256xf32> to vector<8x256xf32>
    %5 = arith.addf %2, %4 : vector<8x256xf32>
    %cst_5 = arith.constant 0.00999999977 : f32
    %6 = vector.broadcast %cst_5 : f32 to vector<8x256xf32>
    %7 = arith.mulf %6, %5 : vector<8x256xf32>
    %8 = arith.maximumf %5, %7 : vector<8x256xf32>
    %9 = arith.truncf %8 : vector<8x256xf32> to vector<8x256xbf16>
    %c0_6 = arith.constant 0 : index
    %c0_7 = arith.constant 0 : index
    %10 = vector.load %arg4[%c0_6, %c0_7] : memref<256x128xbf16, #tpu.memory_space<vmem>>, vector<256x128xbf16>
    %cst_8 = arith.constant dense<0.000000e+00> : vector<8x128xf32>
    %11 = tpu.matmul %9, %10, %cst_8 {dimension_numbers = #tpu.dot_dimension_numbers<[1], [0], [0], [1], [0, 0, 1, 1], [], []>} : vector<8x256xbf16>, vector<256x128xbf16>, vector<8x128xf32> -> vector<8x128xf32>
    %c0_9 = arith.constant 0 : index
    %c0_10 = arith.constant 0 : index
    %12 = vector.load %arg5[%c0_9, %c0_10] : memref<1x128xf32, #tpu.memory_space<vmem>>, vector<1x128xf32>
    %13 = vector.broadcast %12 : vector<1x128xf32> to vector<8x128xf32>
    %14 = arith.addf %11, %13 : vector<8x128xf32>
    %15 = arith.truncf %14 : vector<8x128xf32> to vector<8x128xbf16>
    %16 = math.tanh %15 : vector<8x128xbf16>
    %c0_11 = arith.constant 0 : index
    %c0_12 = arith.constant 0 : index
    %17 = vector.load %arg6[%c0_11, %c0_12] : memref<8x128xbf16, #tpu.memory_space<vmem>>, vector<8x128xbf16>
    tpu.vector_store %arg6[%c0_11, %c0_12], %16 {strides = array<i32>} : memref<8x128xbf16, #tpu.memory_space<vmem>>, vector<8x128xbf16>,
    return
  }
  func.func @transform_0(%arg0: i32) -> (i32, i32) {
    %c0_i32 = arith.constant 0 : i32
    %c0_i32_0 = arith.constant 0 : i32
    return %arg0, %c0_i32 : i32, i32
  }
  func.func @transform_1(%arg0: i32) -> (i32, i32) {
    %c0_i32 = arith.constant 0 : i32
    %c0_i32_0 = arith.constant 0 : i32
    %c0_i32_1 = arith.constant 0 : i32
    return %c0_i32, %c0_i32_0 : i32, i32
  }
  func.func @transform_2(%arg0: i32) -> (i32, i32) {
    %c0_i32 = arith.constant 0 : i32
    %c0_i32_0 = arith.constant 0 : i32
    %c0_i32_1 = arith.constant 0 : i32
    return %c0_i32, %c0_i32_0 : i32, i32
  }
  func.func @transform_3(%arg0: i32) -> (i32, i32) {
    %c0_i32 = arith.constant 0 : i32
    %c0_i32_0 = arith.constant 0 : i32
    %c0_i32_1 = arith.constant 0 : i32
    return %c0_i32, %c0_i32_0 : i32, i32
  }
  func.func @transform_4(%arg0: i32) -> (i32, i32) {
    %c0_i32 = arith.constant 0 : i32
    %c0_i32_0 = arith.constant 0 : i32
    %c0_i32_1 = arith.constant 0 : i32
    return %c0_i32, %c0_i32_0 : i32, i32
  }
  func.func @transform_5(%arg0: i32) -> (i32, i32) {
    %c0_i32 = arith.constant 0 : i32
    %c0_i32_0 = arith.constant 0 : i32
    return %arg0, %c0_i32 : i32, i32
  }
}

</mosaic_0001>

<bundles_post_ra>
// kernel: generator_forward.1
= control target key start
LH: loop header
LB: loop body
LE: loop exit
PB: predicated region body
PF: predicated region fallthrough
CT: control target
= control target key end

     0   :  { %v394_v2 = vmov 0   ;;  %vm59_vm0 = vcmask 261120   ;;  %s498_s0 = inlined_call_operand.vmem [shape: bf16[8,32], index: 0, kind: input, shape index: {}]   ;;  %s499_s1 = inlined_call_operand.vmem [shape: bf16[32,256], index: 1, kind: input, shape index: {}]   ;;  %s500_s2 = inlined_call_operand.vmem [shape: f32[1,256], index: 2, kind: input, shape index: {}]   ;;  %s501_s3 = inlined_call_operand.vmem [shape: bf16[256,128], index: 3, kind: input, shape index: {}]   ;;  %s502_s4 = inlined_call_operand.vmem [shape: f32[1,128], index: 4, kind: input, shape index: {}]   ;;  %s503_s5 = inlined_call_operand.hbm [shape: bf16[8,128], index: 5, kind: output, shape index: {}]  }
   0x1   :  { %v348_v0 = vld [vmem:[%s499_s1 + $0x14] ss:$8 sps:$4 sm:$0xff]   ;;  %v350_v1 = vld [vmem:[%s499_s1 + $0x10] ss:$8 sps:$4 sm:$0xff]   ;;  %95 = vmatprep.mubr.bf16.mxu0 %v394_v2  ;;  %v351_v3 = vld [vmem:[%s499_s1 + $0x4] ss:$8 sps:$4 sm:$0xff]  }
   0x2   :  { %75 = vmatprep.subr.bf16.mxu0 %v348_v0  ;;  %v353_v4 = vld [vmem:[%s499_s1] ss:$8 sps:$4 sm:$0xff]   ;;  %v354_v5 = vld [vmem:[%s501_s3 + $0x78] sm:$0xff]   ;;  %v356_v8 = vld [vmem:[%s501_s3 + $0x70] sm:$0xff]  }
   0x3   :  { %76 = vmatpush1.bf16.msra.mxu0 %v350_v1  ;;  %v355_v6 = vld [vmem:[%s501_s3 + $0x38] sm:$0xff]   ;;  %v22_v7 = vld [vmem:[%s498_s0] sm:$0xf]  ;;  %324 = vmatprep.subr.bf16.mxu1 %v354_v5  ;;  %v357_v9 = vld [vmem:[%s501_s3 + $0x30] sm:$0xff]  }
   0x4   :  { %77 = vmatprep.subr.bf16.mxu0 %v351_v3  ;;  %325 = vmatpush3.bf16.msra.mxu1 %v355_v6  ;;  %v358_v10 = vld [vmem:[%s501_s3 + $0x68] sm:$0xff]   ;;  %v360_v12 = vld [vmem:[%s501_s3 + $0x60] sm:$0xff]   ;;  %v362_v14 = vld [vmem:[%s501_s3 + $0x58] sm:$0xff]  }
   0x5   :  { %326 = vmatprep.subr.bf16.mxu1 %v356_v8  ;;  %v359_v11 = vld [vmem:[%s501_s3 + $0x28] sm:$0xff]   ;;  %v361_v13 = vld [vmem:[%s501_s3 + $0x20] sm:$0xff]  }
   0x7   :  { %78 = vmatpush1.bf16.msra.mxu0 %v353_v4 }
   0x8   :  { %327 = vmatpush3.bf16.msra.mxu1 %v357_v9 }
   0x9   :  { %328 = vmatprep.subr.bf16.mxu1 %v358_v10 }
   0xa   :  { %306 = vmatmul.mubr.msk.bf16.vlgmr.msra.gmra.mxu0 %vm59_vm0, %v22_v7 }
   0xc   :  { %329 = vmatpush3.bf16.msra.mxu1 %v359_v11 }
   0xd   :  { %330 = vmatprep.subr.bf16.mxu1 %v360_v12 }
   0xe   :  { %10 = vsyncpa [#allocation3], 0  ;;  %v363_v15 = vld [vmem:[%s501_s3 + $0x18] sm:$0xff]   ;;  %v364_v16 = vld [vmem:[%s501_s3 + $0x50] sm:$0xff]   ;;  %v29_v22 = vlaneseq  ;;  %s395_s9 = smov [#allocation2]  }
   0xf   :  { %v365_v17 = vld [vmem:[%s501_s3 + $0x10] sm:$0xff]   ;;  %v366_v18 = vld [vmem:[%s501_s3 + $0x48] sm:$0xff]   ;;  %v368_v20 = vld [vmem:[%s501_s3 + $0x40] sm:$0xff]   ;;  %s294_s10 = sshll.u32 %s395_s9, 4  ;;  %s295_s10 = int_to_ptr.vmem [resolvable:$true] %s294_s10 }
  0x10   :  { %331 = vmatpush3.bf16.msra.mxu1 %v361_v13  ;;  %v367_v19 = vld [vmem:[%s501_s3 + $0x8] sm:$0xff]   ;;  %v369_v21 = vld [vmem:[%s501_s3] sm:$0xff]   ;;  %v30_v23 = vshrl.u32 %v29_v22, 7  ;;  %s372_s11 = scalar_lea.vmem %s295_s10, 64  ;;  %p377_p1 = scmp.lt.s32.totalorder %s295_s10, %s295_s10 }
  0x11   :  { %332 = vmatprep.subr.bf16.mxu1 %v362_v14  ;;  %v27_v25 = vld [vmem:[%s500_s2] sm:$0x3]  ;;  %p373_p0 = scmp.ne.s32.totalorder %s295_s10, %s372_s11  ;;  %p378_p2 = scmp.lt.s32.totalorder %s372_s11, %s372_s11 }
  0x12   :  { %v31_v24 = vsub.s32 0, %v30_v23  ;;  %v35_v26 = vsub.s32 1, %v30_v23  ;;  %v307_v42 = vld [vmem:[%s502_s4] ss:$0 sm:$0xff] }
  0x13   :  { %p379_p3 = por %p378_p2, %p377_p1 }
  0x14   :  { %333 = vmatpush3.bf16.msra.mxu1 %v363_v15  ;;  %v32_v27 = vrot.slane %v27_v25, %v31_v24  ;;  %v36_v28 = vrot.slane %v27_v25, %v35_v26 }
  0x15   :  { %334 = vmatprep.subr.bf16.mxu1 %v364_v16  ;;  %p380_p4 = pnand %p379_p3, %p373_p0 }
  0x18   :  { %335 = vmatpush3.bf16.msra.mxu1 %v365_v17 }
  0x19   :  { %336 = vmatprep.subr.bf16.mxu1 %v366_v18 }
  0x1c   :  { %337 = vmatpush3.bf16.msra.mxu1 %v367_v19 }
  0x1d   :  { %338 = vmatprep.subr.bf16.mxu1 %v368_v20 }
  0x20   :  { %339 = vmatpush3.bf16.msra.mxu1 %v369_v21 }
  0xca   :  { %v97_v29 = vpop.f32.mrf.mxu0 }
  0xcb   :  { %v98_v30 = vadd.f32 %v97_v29, %v32_v27 }
  0xcc   :  { %v99_v31 = vpop.f32.mrf.mxu0 }
  0xcd   :  { %v104_v32 = vmul.f32 0.01, %v98_v30  ;;  %v100_v33 = vadd.f32 %v99_v31, %v36_v28 }
  0xce   :  { %v101_v34 = vpop.f32.mrf.mxu0 }
  0xcf   :  { %v105_v35 = vmul.f32 0.01, %v100_v33  ;;  %v106_v36 = vmax.f32 %v98_v30, %v104_v32 }
  0xd0   :  { %v102_v37 = vpop.f32.mrf.mxu0 }
  0xd1   :  { %v107_v38 = vmax.f32 %v100_v33, %v105_v35  ;;  %v108_v40 = vpack.c.bf16 %v106_v36, %v106_v36 }
  0xd3   :  { %v109_v39 = vpack.c.bf16 %v107_v38, %v107_v38 }
  0xd5   :  { %277 = vmatprep.mubr.bf16.mxu1 %v109_v39 }
  0xd6   :  { %278 = vmatmul.mubr.bf16.vlgmr.msra.gmra.mxu1 %v108_v40 }
 0x196   :  { %v340_v41 = vpop.f32.mrf.mxu1 }
 0x198   :  { %v341_v43 = vpop.f32.mrf.mxu1 }
 0x199   :  { %v342_v44 = vadd.f32 %v341_v43, %v340_v41 }
 0x19a   :  { %v343_v45 = vpop.f32.mrf.mxu1 }
 0x19b   :  { %v280_v46 = vadd.f32 %v342_v44, %v307_v42 }
 0x19c   :  { %v344_v47 = vpop.f32.mrf.mxu1 }
 0x19d   :  { %v285_v48 = vpack.c.bf16 %v280_v46, %v280_v46 }
 0x19f   :  { %370 = vtanh.bf16 %v285_v48 }
 0x1ad   :  { %v371_v49 = vpop.eup %370 }
 0x1ae   :  { %287 = vst [vmem:[#allocation2] sm:$0xf] %v371_v49 }
 0x1af   :  { %383 = shalt.err (!%p380_p4)
}
 0x1b0   :  { %297 = dma.vmem_to_hbm [thread:$0]  %s295_s10, 64, %s503_s5, [#allocation3]  }
 0x1b1   :  { %392 = dma.done.wait [#allocation3], 64  }
 0x1b2   :  { %393 = vsyncadd [#allocation3], 4294967232 }
 0x1b3   :  { %301 = vsyncpa [#allocation3], 1 }

</bundles_post_ra>
